<compile_context>
chip_gen: v5e
topology: v5e:2x2
jax: 0.10.0
libtpu: 0.0.40
codegen_flags: <defaults>
</compile_context>

<pallas_src>
import functools

import jax
import jax.numpy as jnp
import numpy as np
from jax import lax
from jax.experimental import pallas as pl
from jax.experimental.pallas import tpu as pltpu


def _csc_kernel(slots_ref, slots_n_ref, dss_ref, key_ref,
                out_slots_ref, out_dsk_ref, *, cond_num, temp, eps):
    f32 = jnp.float32
    slots = slots_ref[...].astype(f32)      # (K, D)  raw slot embeddings (values)
    slots_n = slots_n_ref[...].astype(f32)  # (K, D)  L2-normalized slots
    dss = dss_ref[...]                      # (K, K)  masked slot-slot dots (-inf on/above diag)

    K, D = slots.shape
    bt, _, N = key_ref.shape
    inv_temp = f32(1.0 / temp)

    # Batch-invariant pieces of the softmax (computed once per grid step).
    lss = dss * inv_temp                                   # (K, K)
    m_ss = jnp.max(lss, axis=-1, keepdims=True)            # (K, 1)
    row = lax.broadcasted_iota(jnp.int32, (K, 1), 0)
    key_row_ok = row < cond_num                            # only first cond_num slots see keys

    # bt is a small trace-time constant -> statically unrolled loop of clean 2-D MXU ops.
    for b in range(bt):
        key_b = key_ref[b].astype(f32)                     # (D, N): channels x tokens

        # F.normalize(key, dim=channel): fold the per-token 1/max(||.||, 1e-12) into dots.
        sumsq = jnp.sum(key_b * key_b, axis=0, keepdims=True)        # (1, N)
        col_inv = jnp.minimum(lax.rsqrt(sumsq), f32(1e12))           # EUP rsqrt, no VPU divide

        dsk = lax.dot_general(slots_n, key_b, (((1,), (0,)), ((), ())),
                              preferred_element_type=f32) * col_inv  # (K, N)
        dsk = jnp.where(key_row_ok, dsk, -jnp.inf)                   # masked slot->key dots

        # Softmax over the virtual concatenation [dss | dsk] along the last axis.
        lsk = dsk * inv_temp
        m = jnp.maximum(m_ss, jnp.max(lsk, axis=-1, keepdims=True))  # (K, 1)
        e_ss = jnp.exp(lss - m)                                      # (K, K)
        e_sk = jnp.exp(lsk - m)                                      # (K, N)
        inv_den = 1.0 / (jnp.sum(e_ss, axis=-1, keepdims=True)
                         + jnp.sum(e_sk, axis=-1, keepdims=True))    # only (K,1) divides
        a_ss = e_ss * inv_den
        a_sk = e_sk * inv_den
        # attn / (attn.sum(dim=-1, keepdim=True) + eps)
        renorm = 1.0 / (jnp.sum(a_ss, axis=-1, keepdims=True)
                        + jnp.sum(a_sk, axis=-1, keepdims=True) + f32(eps))
        a_ss = a_ss * renorm
        a_sk = a_sk * renorm

        # Attention-weighted aggregation over [slots ; key tokens] — split, no concat.
        out_b = (lax.dot_general(a_ss, slots, (((1,), (0,)), ((), ())),
                                 preferred_element_type=f32)
                 + lax.dot_general(a_sk, key_b, (((1,), (1,)), ((), ())),
                                   preferred_element_type=f32))      # (K, D)

        out_slots_ref[b] = out_b.astype(out_slots_ref.dtype)
        out_dsk_ref[b] = dsk.astype(out_dsk_ref.dtype)


def causal_semantic_components(key_nchw, slot_embed, *, cond_num=4, temp=0.07,
                               eps=1e-7, batch_block=None):
    """Pallas implementation of CausalSemanticComponents.forward (val=None)."""
    B, C, H, W = key_nchw.shape
    K, D = slot_embed.shape
    assert C == D, "key channel dim must equal dim_slot"
    N = H * W

    # NCHW -> (B, C, N): pure reshape (no transpose / extra HBM pass); original dtype
    # is passed straight through and cast per-tile inside the kernel.
    key = key_nchw.reshape(B, C, N)

    # Batch-invariant slot-side work hoisted out of the (serial) per-batch grid loop.
    slots = slot_embed.astype(jnp.float32)
    slots_n = slots / jnp.maximum(
        jnp.sqrt(jnp.sum(slots * slots, axis=-1, keepdims=True)), 1e-12)
    rr = jnp.arange(K)[:, None]
    cc = jnp.arange(K)[None, :]
    dss_masked = jnp.where(cc < rr, slots_n @ slots_n.T,
                           -jnp.inf).astype(jnp.float32)              # (K, K)

    if batch_block is None:
        # <=2 grid steps: amortizes the ~0.35us/step overhead and still feeds both
        # TensorCores on v7x via the "parallel" grid axis.
        bt = B // 2 if (B > 1 and B % 2 == 0) else B
    else:
        bt = batch_block
    assert B % bt == 0, "batch_block must divide the batch size"
    grid = (B // bt,)

    kernel = functools.partial(_csc_kernel, cond_num=cond_num, temp=temp, eps=eps)

    out_slots, dots_sk = pl.pallas_call(
        kernel,
        out_shape=(
            jax.ShapeDtypeStruct((B, K, D), jnp.float32),
            jax.ShapeDtypeStruct((B, K, N), jnp.float32),
        ),
        grid_spec=pltpu.PrefetchScalarGridSpec(
            num_scalar_prefetch=0,
            grid=grid,
            in_specs=[
                pl.BlockSpec((K, D), lambda i: (0, 0)),        # slots (values), shared
                pl.BlockSpec((K, D), lambda i: (0, 0)),        # normalized slots, shared
                pl.BlockSpec((K, K), lambda i: (0, 0)),        # masked slot-slot dots, shared
                pl.BlockSpec((bt, C, N), lambda i: (i, 0, 0)),  # per-step batch of tokens
            ],
            out_specs=[
                pl.BlockSpec((bt, K, D), lambda i: (i, 0, 0)),
                pl.BlockSpec((bt, K, N), lambda i: (i, 0, 0)),
            ],
        ),
        compiler_params=pltpu.CompilerParams(
            dimension_semantics=("parallel",)),
    )(slots, slots_n, dss_masked, key)

    # Assemble the (B, K, K+N) `dots` return value. The slot-slot block is
    # batch-invariant, so it is broadcast here instead of being recomputed and
    # rewritten B times by the kernel.
    # TODO(synk): fuse this concat into the kernel (store dsk at lane offset K) once
    # unaligned minor-dim stores are confirmed on the target Mosaic version.
    out_dots = jnp.concatenate(
        [jnp.broadcast_to(dss_masked[None], (B, K, K)), dots_sk], axis=-1)
    return out_slots, out_dots


def reference_jax(key_nchw, slot_embed, *, cond_num=4, temp=0.07, eps=1e-7):
    """Pure-JAX transcription of the PyTorch forward, for correctness check."""
    B, Cc, H, W = key_nchw.shape
    K, D = slot_embed.shape
    N = H * W
    slots = jnp.broadcast_to(slot_embed[None], (B, K, D)).astype(jnp.float32)
    key = jnp.transpose(key_nchw, (0, 2, 3, 1)).reshape(B, N, Cc).astype(jnp.float32)
    val = key
    slot_key = jnp.concatenate([slots, key], axis=1)

    def norm(x):
        return x / jnp.maximum(
            jnp.sqrt(jnp.sum(x * x, axis=-1, keepdims=True)), 1e-12)

    dots = jnp.einsum('bkd,bcd->bkc', norm(slots), norm(slot_key))
    s2s = jnp.tril(jnp.ones((K, K), jnp.float32), -1)
    s2k = jnp.concatenate(
        [jnp.ones((cond_num, N), jnp.float32),
         jnp.zeros((K - cond_num, N), jnp.float32)], axis=0)
    mask = jnp.concatenate([s2s, s2k], axis=1)[None]
    dots = jnp.where(mask == 0, -jnp.inf, dots)
    attn = jax.nn.softmax(dots / temp, axis=-1)
    slot_val = jnp.concatenate([slots, val], axis=1)
    out = jnp.einsum('bkc,bdk->bdc', slot_val,
                     attn / (jnp.sum(attn, axis=2, keepdims=True) + eps))
    return out, dots


if __name__ == "__main__":
    # small, forward-consistent shapes
    B, D, H, W = 2, 32, 8, 8       # key: NCHW, channels == dim_slot
    num_slots, cond_num = 8, 4
    temp, eps = 0.07, 1e-7

    k_key, k_emb = jax.random.split(jax.random.PRNGKey(0))
    key_nchw = jax.random.normal(k_key, (B, D, H, W), dtype=jnp.float32)
    # deterministic "nn.Embedding(num_slots, dim_slot)" weight
    slot_embed = jax.random.normal(k_emb, (num_slots, D), dtype=jnp.float32)

    out_slots, out_dots = causal_semantic_components(
        key_nchw, slot_embed, cond_num=cond_num, temp=temp, eps=eps)
    jax.block_until_ready((out_slots, out_dots))

    ref_slots, ref_dots = reference_jax(
        key_nchw, slot_embed, cond_num=cond_num, temp=temp, eps=eps)
    jax.block_until_ready((ref_slots, ref_dots))

    assert out_slots.shape == ref_slots.shape and out_dots.shape == ref_dots.shape
    # Tolerances allow for rsqrt-based normalization and split-block reductions
    # (reassociation-level differences only; -inf masked entries compare exactly).
    assert np.allclose(np.asarray(out_slots), np.asarray(ref_slots),
                       rtol=1e-4, atol=1e-4)
    assert np.allclose(np.asarray(out_dots), np.asarray(ref_dots),
                       rtol=1e-4, atol=1e-4)
    print("KERNEL_OK")
</pallas_src>

<mosaic_0001>
module attributes {stable_mosaic.version = 11 : i64} {
  func.func @_csc_kernel(%arg0: i32, %arg1: memref<8x32xf32, #tpu.memory_space<vmem>>, %arg2: memref<8x32xf32, #tpu.memory_space<vmem>>, %arg3: memref<8x8xf32, #tpu.memory_space<vmem>>, %arg4: memref<1x32x64xf32, #tpu.memory_space<vmem>>, %arg5: memref<1x8x32xf32, #tpu.memory_space<vmem>>, %arg6: memref<1x8x64xf32, #tpu.memory_space<vmem>>) attributes {dimension_semantics = [#tpu.dimension_semantics<parallel>], iteration_bounds = array<i64: 2>, scalar_prefetch = 0 : i64, scratch_operands = 0 : i64, tpu.core_type = #tpu.core_type<tc>, window_params = [{pipeline_mode = #tpu.pipeline_mode<synchronous>, transform_indices = @transform_0, window_bounds = array<i64: 8, 32>}, {pipeline_mode = #tpu.pipeline_mode<synchronous>, transform_indices = @transform_1, window_bounds = array<i64: 8, 32>}, {pipeline_mode = #tpu.pipeline_mode<synchronous>, transform_indices = @transform_2, window_bounds = array<i64: 8, 8>}, {transform_indices = @transform_3, window_bounds = array<i64: 1, 32, 64>}, {transform_indices = @transform_4, window_bounds = array<i64: 1, 8, 32>}, {transform_indices = @transform_5, window_bounds = array<i64: 1, 8, 64>}]} {
    %c0 = arith.constant 0 : index
    %c0_0 = arith.constant 0 : index
    %0 = vector.load %arg1[%c0, %c0_0] : memref<8x32xf32, #tpu.memory_space<vmem>>, vector<8x32xf32>
    %c0_1 = arith.constant 0 : index
    %c0_2 = arith.constant 0 : index
    %1 = vector.load %arg2[%c0_1, %c0_2] : memref<8x32xf32, #tpu.memory_space<vmem>>, vector<8x32xf32>
    %c0_3 = arith.constant 0 : index
    %c0_4 = arith.constant 0 : index
    %2 = vector.load %arg3[%c0_3, %c0_4] : memref<8x8xf32, #tpu.memory_space<vmem>>, vector<8x8xf32>
    %cst = arith.constant 14.2857141 : f32
    %3 = vector.broadcast %cst : f32 to vector<8x8xf32>
    %4 = arith.mulf %2, %3 : vector<8x8xf32>
    %cst_5 = arith.constant dense<0xFF800000> : vector<8xf32>
    %5 = vector.multi_reduction <maximumf>, %4, %cst_5 [1] : vector<8x8xf32> to vector<8xf32>
    %6 = vector.shape_cast %5 : vector<8xf32> to vector<8x1xf32>
    %7 = tpu.iota {dimensions = array<i32: 0>} : vector<8x1xi32>
    %c4_i32 = arith.constant 4 : i32
    %8 = vector.broadcast %c4_i32 : i32 to vector<8x1xi32>
    %9 = arith.cmpi slt, %7, %8 : vector<8x1xi32>
    %c0_6 = arith.constant 0 : index
    %c0_7 = arith.constant 0 : index
    %c0_8 = arith.constant 0 : index
    %10 = vector.load %arg4[%c0_6, %c0_7, %c0_8] : memref<1x32x64xf32, #tpu.memory_space<vmem>>, vector<1x32x64xf32>
    %11 = vector.shape_cast %10 : vector<1x32x64xf32> to vector<32x64xf32>
    %12 = arith.mulf %11, %11 : vector<32x64xf32>
    %cst_9 = arith.constant dense<0.000000e+00> : vector<64xf32>
    %13 = vector.multi_reduction <add>, %12, %cst_9 [0] : vector<32x64xf32> to vector<64xf32>
    %14 = vector.shape_cast %13 : vector<64xf32> to vector<1x64xf32>
    %15 = math.rsqrt %14 : vector<1x64xf32>
    %cst_10 = arith.constant 9.99999995E+11 : f32
    %16 = vector.broadcast %cst_10 : f32 to vector<1x64xf32>
    %17 = arith.minimumf %15, %16 : vector<1x64xf32>
    %cst_11 = arith.constant dense<0.000000e+00> : vector<8x64xf32>
    %18 = tpu.matmul %1, %11, %cst_11 {dimension_numbers = #tpu.dot_dimension_numbers<[1], [0], [0], [1], [0, 0, 1, 1], [], []>} : vector<8x32xf32>, vector<32x64xf32>, vector<8x64xf32> -> vector<8x64xf32>
    %19 = vector.broadcast %17 : vector<1x64xf32> to vector<8x64xf32>
    %20 = arith.mulf %18, %19 : vector<8x64xf32>
    %cst_12 = arith.constant 0xFF800000 : f32
    %21 = vector.shape_cast %9 : vector<8x1xi1> to vector<8x1xi1>
    %22 = vector.broadcast %21 : vector<8x1xi1> to vector<8x64xi1>
    %23 = vector.broadcast %cst_12 : f32 to vector<8x64xf32>
    %24 = arith.select %22, %20, %23 : vector<8x64xi1>, vector<8x64xf32>
    %cst_13 = arith.constant 14.2857141 : f32
    %25 = vector.broadcast %cst_13 : f32 to vector<8x64xf32>
    %26 = arith.mulf %24, %25 : vector<8x64xf32>
    %cst_14 = arith.constant dense<0xFF800000> : vector<8xf32>
    %27 = vector.multi_reduction <maximumf>, %26, %cst_14 [1] : vector<8x64xf32> to vector<8xf32>
    %28 = vector.shape_cast %27 : vector<8xf32> to vector<8x1xf32>
    %29 = arith.maximumf %6, %28 : vector<8x1xf32>
    %30 = vector.broadcast %29 : vector<8x1xf32> to vector<8x8xf32>
    %31 = arith.subf %4, %30 : vector<8x8xf32>
    %32 = math.exp %31 : vector<8x8xf32>
    %33 = vector.broadcast %29 : vector<8x1xf32> to vector<8x64xf32>
    %34 = arith.subf %26, %33 : vector<8x64xf32>
    %35 = math.exp %34 : vector<8x64xf32>
    %cst_15 = arith.constant dense<0.000000e+00> : vector<8xf32>
    %36 = vector.multi_reduction <add>, %32, %cst_15 [1] : vector<8x8xf32> to vector<8xf32>
    %37 = vector.shape_cast %36 : vector<8xf32> to vector<8x1xf32>
    %cst_16 = arith.constant dense<0.000000e+00> : vector<8xf32>
    %38 = vector.multi_reduction <add>, %35, %cst_16 [1] : vector<8x64xf32> to vector<8xf32>
    %39 = vector.shape_cast %38 : vector<8xf32> to vector<8x1xf32>
    %40 = arith.addf %37, %39 : vector<8x1xf32>
    %cst_17 = arith.constant 1.000000e+00 : f32
    %41 = vector.broadcast %cst_17 : f32 to vector<8x1xf32>
    %42 = arith.divf %41, %40 : vector<8x1xf32>
    %43 = vector.broadcast %42 : vector<8x1xf32> to vector<8x8xf32>
    %44 = arith.mulf %32, %43 : vector<8x8xf32>
    %45 = vector.broadcast %42 : vector<8x1xf32> to vector<8x64xf32>
    %46 = arith.mulf %35, %45 : vector<8x64xf32>
    %cst_18 = arith.constant dense<0.000000e+00> : vector<8xf32>
    %47 = vector.multi_reduction <add>, %44, %cst_18 [1] : vector<8x8xf32> to vector<8xf32>
    %48 = vector.shape_cast %47 : vector<8xf32> to vector<8x1xf32>
    %cst_19 = arith.constant dense<0.000000e+00> : vector<8xf32>
    %49 = vector.multi_reduction <add>, %46, %cst_19 [1] : vector<8x64xf32> to vector<8xf32>
    %50 = vector.shape_cast %49 : vector<8xf32> to vector<8x1xf32>
    %51 = arith.addf %48, %50 : vector<8x1xf32>
    %cst_20 = arith.constant 1.000000e-07 : f32
    %52 = vector.broadcast %cst_20 : f32 to vector<8x1xf32>
    %53 = arith.addf %51, %52 : vector<8x1xf32>
    %cst_21 = arith.constant 1.000000e+00 : f32
    %54 = vector.broadcast %cst_21 : f32 to vector<8x1xf32>
    %55 = arith.divf %54, %53 : vector<8x1xf32>
    %56 = vector.broadcast %55 : vector<8x1xf32> to vector<8x8xf32>
    %57 = arith.mulf %44, %56 : vector<8x8xf32>
    %58 = vector.broadcast %55 : vector<8x1xf32> to vector<8x64xf32>
    %59 = arith.mulf %46, %58 : vector<8x64xf32>
    %cst_22 = arith.constant dense<0.000000e+00> : vector<8x32xf32>
    %60 = tpu.matmul %57, %0, %cst_22 {dimension_numbers = #tpu.dot_dimension_numbers<[1], [0], [0], [1], [0, 0, 1, 1], [], []>} : vector<8x8xf32>, vector<8x32xf32>, vector<8x32xf32> -> vector<8x32xf32>
    %cst_23 = arith.constant dense<0.000000e+00> : vector<8x32xf32>
    %61 = tpu.matmul %59, %11, %cst_23 {dimension_numbers = #tpu.dot_dimension_numbers<[1], [1], [0], [0], [0, 0, 1, 0], [], []>} : vector<8x64xf32>, vector<32x64xf32>, vector<8x32xf32> -> vector<8x32xf32>
    %62 = arith.addf %60, %61 : vector<8x32xf32>
    %c0_24 = arith.constant 0 : index
    %c0_25 = arith.constant 0 : index
    %c0_26 = arith.constant 0 : index
    %63 = vector.load %arg5[%c0_24, %c0_25, %c0_26] : memref<1x8x32xf32, #tpu.memory_space<vmem>>, vector<1x8x32xf32>
    %64 = vector.shape_cast %63 : vector<1x8x32xf32> to vector<8x32xf32>
    %65 = vector.shape_cast %62 : vector<8x32xf32> to vector<1x8x32xf32>
    tpu.vector_store %arg5[%c0_24, %c0_25, %c0_26], %65 {strides = array<i32>} : memref<1x8x32xf32, #tpu.memory_space<vmem>>, vector<1x8x32xf32>,
    %c0_27 = arith.constant 0 : index
    %c0_28 = arith.constant 0 : index
    %c0_29 = arith.constant 0 : index
    %66 = vector.load %arg6[%c0_27, %c0_28, %c0_29] : memref<1x8x64xf32, #tpu.memory_space<vmem>>, vector<1x8x64xf32>
    %67 = vector.shape_cast %66 : vector<1x8x64xf32> to vector<8x64xf32>
    %68 = vector.shape_cast %24 : vector<8x64xf32> to vector<1x8x64xf32>
    tpu.vector_store %arg6[%c0_27, %c0_28, %c0_29], %68 {strides = array<i32>} : memref<1x8x64xf32, #tpu.memory_space<vmem>>, vector<1x8x64xf32>,
    return
  }
  func.func @transform_0(%arg0: i32) -> (i32, i32) {
    %c0_i32 = arith.constant 0 : i32
    %c0_i32_0 = arith.constant 0 : i32
    %c0_i32_1 = arith.constant 0 : i32
    return %c0_i32, %c0_i32_0 : i32, i32
  }
  func.func @transform_1(%arg0: i32) -> (i32, i32) {
    %c0_i32 = arith.constant 0 : i32
    %c0_i32_0 = arith.constant 0 : i32
    %c0_i32_1 = arith.constant 0 : i32
    return %c0_i32, %c0_i32_0 : i32, i32
  }
  func.func @transform_2(%arg0: i32) -> (i32, i32) {
    %c0_i32 = arith.constant 0 : i32
    %c0_i32_0 = arith.constant 0 : i32
    %c0_i32_1 = arith.constant 0 : i32
    return %c0_i32, %c0_i32_0 : i32, i32
  }
  func.func @transform_3(%arg0: i32) -> (i32, i32, i32) {
    %c0_i32 = arith.constant 0 : i32
    %c0_i32_0 = arith.constant 0 : i32
    %c0_i32_1 = arith.constant 0 : i32
    return %arg0, %c0_i32, %c0_i32_0 : i32, i32, i32
  }
  func.func @transform_4(%arg0: i32) -> (i32, i32, i32) {
    %c0_i32 = arith.constant 0 : i32
    %c0_i32_0 = arith.constant 0 : i32
    %c0_i32_1 = arith.constant 0 : i32
    return %arg0, %c0_i32, %c0_i32_0 : i32, i32, i32
  }
  func.func @transform_5(%arg0: i32) -> (i32, i32, i32) {
    %c0_i32 = arith.constant 0 : i32
    %c0_i32_0 = arith.constant 0 : i32
    %c0_i32_1 = arith.constant 0 : i32
    return %arg0, %c0_i32, %c0_i32_0 : i32, i32, i32
  }
}

</mosaic_0001>

<bundles_post_ra>
// kernel: tpu_custom_call.1
= control target key start
LH: loop header
LB: loop body
LE: loop exit
PB: predicated region body
PF: predicated region fallthrough
CT: control target
= control target key end

     0   :  { %11 = vsyncpa [#allocation3], 0  ;;  %s1240_s0 = inlined_call_operand.hbm [shape: f32[8,32], index: 0, kind: input, shape index: {}]   ;;  %s1241_s1 = inlined_call_operand.hbm [shape: f32[8,32], index: 1, kind: input, shape index: {}]   ;;  %s1242_s2 = inlined_call_operand.hbm [shape: f32[8,8], index: 2, kind: input, shape index: {}]   ;;  %s1243_s3 = inlined_call_operand.hbm [shape: f32[2,32,64], index: 3, kind: input, shape index: {}]   ;;  %s1244_s4 = inlined_call_operand.hbm [shape: f32[2,8,32], index: 4, kind: output, shape index: {0}]   ;;  %s1245_s5 = inlined_call_operand.hbm [shape: f32[2,8,64], index: 5, kind: output, shape index: {1}]  }
   0x1   :  { %12 = vsyncpa [#allocation6], 0 }
   0x2   :  { %13 = vsyncpa [#allocation9], 0 }
   0x3   :  { %15 = vsyncpa [#allocation9 + $0x1], 0 }
   0x4   :  { %16 = vsyncpa [#allocation4], 0 }
   0x5   :  { %18 = vsyncpa [#allocation4 + $0x1], 0 }
   0x6   :  { %19 = vsyncpa [#allocation12], 0 }
   0x7   :  { %21 = vsyncpa [#allocation12 + $0x1], 0  ;;  %s1048_s18 = smov 0   ;;  %s1050_s19 = smov 0  }
   0x8   :  { %s1052_s20 = smov 0   ;;  %s1054_s21 = smov 0  }
   0x9 LB: > { %s1069_s22 = sadd.s32 4294967295, %s1011_s21   ;;  %s661_s23 = sadd.s32 4294967294, %s1011_s21   ;;  %s1011_s21 = sphi %s1054_s21, %s1255_s21   ;;  %s1007_s20 = sphi %s1052_s20, %s1254_s20   ;;  %s1003_s19 = sphi %s1050_s19, %s1253_s19   ;;  %s999_s18 = sphi %s1048_s18, %s1252_s18  }
   0xa   : > { %p110_p0 = scmp.ne.s32.totalorder %s1003_s19, %s999_s18  ;;  %p111_p1 = scmp.eq.s32.totalorder %s1069_s22, 0 }
   0xb   : > { %p134_p2 = scmp.eq.s32.totalorder %s1069_s22, 1  ;;  %p140_p3 = scmp.eq.s32.totalorder %s661_s23, 1 }
   0xc   : > { %p1078_p4 = por %p111_p1, %p110_p0  ;;  %p662_p5 = scmp.ge.s32.totalorder %s1011_s21, 1 }
   0xd   : > { %p1083_p6 = por %p140_p3, %p110_p0  ;;  %p173_p7 = scmp.lt.s32.totalorder %s1011_s21, 3 }
   0xe   : > { %s197_s28 = sshll.u32 %s1241_s1, 4  ;;  %s1013_s30 = smov [#allocation5]   ;;  %s198_s28 = int_to_ptr.hbm [resolvable:$true] %s197_s28 }
   0xf   : > { %p1091_p8 = pnand %p662_p5, %p173_p7  ;;  %s199_s6 = sshll.u32 %s1013_s30, 4  ;;  %s200_s6 = int_to_ptr.vmem [resolvable:$true] %s199_s6 }
  0x10   : > { %s185_s9 = sshll.u32 %s1240_s0, 4  ;;  %s209_s12 = sshll.u32 %s1242_s2, 4  ;;  %s186_s9 = int_to_ptr.hbm [resolvable:$true] %s185_s9  ;;  %s210_s12 = int_to_ptr.hbm [resolvable:$true] %s209_s12 }
  0x11   : > { %p709_p10 = pneg %p1091_p8  ;;  %s1014_s13 = smov [#allocation2]  }
  0x12   : > { %s187_s14 = sshll.u32 %s1014_s13, 4  ;;  %s1015_s15 = smov [#allocation7]   ;;  %s188_s14 = int_to_ptr.vmem [resolvable:$true] %s187_s14 }
  0x13   : > { %p710_p11 = pnand %p709_p10, %p111_p1  ;;  %s211_s16 = sshll.u32 %s1015_s15, 4  ;;  %s212_s16 = int_to_ptr.vmem [resolvable:$true] %s211_s16 }
  0x14   : > { %s1107_s17 = sadd.s32 1, %s1011_s21   ;;  %s97_s26 = sadd.s32 1, %s1007_s20 }
  0x15   : > { %715 = dma.hbm_to_vmem [thread:$0]  (!%p710_p11), %s198_s28, 128, %s200_s6, [#allocation6]  }
  0x16   : > { %712 = dma.hbm_to_vmem [thread:$0]  (!%p710_p11), %s186_s9, 128, %s188_s14, [#allocation3]  }
  0x17   : > { %718 = dma.hbm_to_vmem [thread:$0]  (!%p710_p11), %s210_s12, 128, %s212_s16, [#allocation6]  }
  0x18   : > { %s94_s23 = ssub.s32 %s1011_s21, %s1107_s17  ;;  %p104_p13 = scmp.ne.s32.totalorder %s1007_s20, %s1003_s19 }
  0x19   : > { %p95_p12 = scmp.eq.s32.totalorder %s94_s23, 0  ;;  %p105_p0 = scmp.eq.s32.totalorder %s1011_s21, 0 }
  0x1a   : > { %p733_p3 = scmp.lt.s32.totalorder %s1011_s21, 2  ;;  %p1121_p7 = por %p134_p2, %p104_p13 }
  0x1b   : > { %s1117_s27 = scalar_select %p95_p12, %s1007_s20, %s97_s26  }
  0x1c   : > { %p106_p5 = por %p105_p0, %p104_p13  ;;  %s222_s30 = sand.u32 1, %s1007_s20  }
  0x1d   : > { %s690_s6 = sshll.u32 %s1011_s21, 5  ;;  %s667_s7 = sshll.u32 %s222_s30, 5 }
  0x1e   : > { %s231_s10 = scalar_lea.hbm %s1243_s3, %s690_s6  ;;  %s226_s12 = scalar_lea.vmem [#allocation8], %s667_s7 }
  0x1f   : > { %s232_s11 = sshll.u32 %s231_s10, 4  ;;  %s234_s13 = sshll.u32 %s226_s12, 4  ;;  %s233_s11 = int_to_ptr.hbm [resolvable:$true] %s232_s11  ;;  %s235_s13 = int_to_ptr.vmem [resolvable:$true] %s234_s13 }
  0x20   : > { %p1132_p10 = pnand %p733_p3, %p106_p5  ;;  %s223_s15 = scalar_lea.sflag [#allocation9], %s222_s30 }
  0x21   : > { %s875_s16 = sshra.s32 %s233_s11, 4  ;;  %s882_s7 = scalar_lea.hbm %s1243_s3, 64  ;;  %s876_s16 = int_to_ptr.hbm [resolvable:$true] %s875_s16 }
  0x22   : > { %s877_s23 = scalar_lea.hbm %s876_s16, 32  ;;  %p879_p11 = pneg %p1132_p10 }
  0x23   : > { %p878_p2 = scmp.ne.s32.totalorder %s876_s16, %s877_s23  ;;  %p883_p0 = scmp.lt.s32.totalorder %s876_s16, %s1243_s3 }
  0x24   : > { %p884_p3 = scmp.lt.s32.totalorder %s882_s7, %s877_s23 }
  0x25   : > { %p880_p12 = pnand %p879_p11, %p878_p2 }
  0x26   : > { %p885_p5 = por %p884_p3, %p883_p0 }
  0x27   : > { %p881_p13 = pneg %p880_p12 }
  0x29   : > { %p886_p9 = pnand %p885_p5, %p881_p13 }
  0x2b   : > { %889 = shalt.err (!%p886_p9)
}
  0x2c   : > { %s1016_s30 = smov 128   ;;  %s1017_s10 = smov 8  }
  0x2d   : > { %722 = dma.hbm_to_vmem [thread:$0]  (!%p1132_p10), %s233_s11, 512, %s235_s13, %s223_s15, %s1016_s30, %s1016_s30, %s1017_s10  }
  0x2e   : > { %246 = sbr.rel (%p1091_p8) target bundleno = 758 (0x2f6), region = 36 }
  0x33   : > { %978 = dma.done.wait (%p111_p1), [#allocation3], 128  }
  0x34   : > { %980 = vsyncadd (%p111_p1), [#allocation3], 4294967168 }
  0x35   : > { %982 = dma.done.wait (%p111_p1), [#allocation6], 256  }
  0x36   : > { %984 = vsyncadd (%p111_p1), [#allocation6], 4294967040  ;;  %s1157_s12 = sand.u32 1, %s1003_s19  }
  0x37   : > { %s674_s29 = sshll.u32 %s1157_s12, 5  ;;  %s264_s11 = scalar_lea.sflag [#allocation9], %s1157_s12 }
  0x38   : > { %s267_s13 = scalar_lea.vmem [#allocation8], %s674_s29 }
  0x39   : > { %986 = dma.done.wait (%p1078_p4), %s264_s11, 512  }
  0x3a   : > { %988 = vsyncadd (%p1078_p4), %s264_s11, 4294966784  ;;  %v314_v0 = vld [vmem:[%s267_s13 + $0x18] sm:$0xff]  ;;  %vm319_vm0 = vcmask 523264   ;;  %v313_v1 = vld [vmem:[%s267_s13 + $0x10] sm:$0xff]  ;;  %vm304_vm1 = vcmask 64512   ;;  %vm344_vm2 = vcmask 261120   ;;  %v308_v31 = vlaneseq }
  0x3b   : > { %v312_v2 = vld [vmem:[%s267_s13 + $0x8] sm:$0xff]  ;;  %360 = vmatpush.msra.mxu0 %v314_v0  ;;  %v317_v3 = vmul.f32 %v313_v1, %v313_v1  ;;  %v311_v5 = vld [vmem:[%s267_s13] sm:$0xff]  ;;  %v302_v6 = vld [vmem:[#allocation7] sm:$0xff]  ;;  %678 = vmatpush.xpose.msk.msra.mxu1 %vm319_vm0, %v314_v0  ;;  %v318_v7 = vmul.f32 %v314_v0, %v314_v0  ;;  %s675_s24 = sshll.u32 %s1157_s12, 3  ;;  %s686_s15 = sshll.u32 %s1069_s22, 3 }
  0x3c   : > { %v316_v4 = vmul.f32 %v312_v2, %v312_v2  ;;  %v315_v8 = vmul.f32 %v311_v5, %v311_v5  ;;  %v303_v9 = vmul.f32 14.285714, %v302_v6  ;;  %v301_v15 = vld [vmem:[#allocation5] sm:$0xff]  ;;  %v309_v33 = vshrl.u32 %v308_v31, 7  ;;  %s1178_s14 = scalar_lea.vmem [#allocation11], %s675_s24  ;;  %s522_s26 = scalar_lea.hbm %s1245_s5, %s686_s15 }
  0x3d   : > { %361 = vmatpush.msra.mxu0 %v313_v1  ;;  %v323_v11 = vsel %vm319_vm0, %v317_v3, 0.0  ;;  %v325_v16 = vsel %vm319_vm0, %v318_v7, 0.0  ;;  %s524_s6 = sshll.u32 %s1178_s14, 4  ;;  %s526_s7 = sshll.u32 %s522_s26, 4  ;;  %s525_s6 = int_to_ptr.vmem [resolvable:$true] %s524_s6  ;;  %s527_s7 = int_to_ptr.hbm [resolvable:$true] %s526_s7 }
  0x3e   : > { %v321_v10 = vsel %vm319_vm0, %v316_v4, 0.0  ;;  %v320_v12 = vsel %vm319_vm0, %v315_v8, 0.0  ;;  %v305_v13 = vsel %vm304_vm1, %v303_v9, -inf  ;;  %vm310_vm6 = vcmp.lt.s32.totalorder %v309_v33, 4  ;;  %v300_v4 = vld [vmem:[#allocation2] sm:$0xff]  ;;  %s498_s8 = scalar_lea.sflag [#allocation12], %s1157_s12 }
  0x3f   : > { %362 = vmatpush.msra.mxu0 %v312_v2  ;;  %v322_v14 = vadd.f32 %v321_v10, %v320_v12  ;;  %306 = vmax.xlane.f32.xlu0 %v305_v13  ;;  %s919_s9 = sshra.s32 %s527_s7, 4  ;;  %s925_s22 = scalar_lea.hbm %s1245_s5, 16  ;;  %s920_s9 = int_to_ptr.hbm [resolvable:$true] %s919_s9 }
  0x40   : > { %679 = vmatpush.xpose.msk.msra.mxu1 %vm319_vm0, %v313_v1  ;;  %485 = vmatpush.msra.mxu2 %v300_v4  ;;  %s921_s30 = scalar_lea.hbm %s920_s9, 8  ;;  %p926_p9 = scmp.lt.s32.totalorder %s920_s9, %s1245_s5 }
  0x41   : > { %v324_v17 = vadd.f32 %v323_v11, %v322_v14  ;;  %363 = vmatpush.msra.mxu0 %v311_v5  ;;  %p922_p1 = scmp.ne.s32.totalorder %s920_s9, %s921_s30  ;;  %p927_p10 = scmp.lt.s32.totalorder %s925_s22, %s921_s30 }
  0x42   : > { %677 = vmatmul.msk.f32.vlgmr.msra.gmra.mxu0 %vm344_vm2, %v301_v15 }
  0x43   : > { %v326_v18 = vadd.f32 %v325_v16, %v324_v17  ;;  %p923_p4 = pnand %p922_p1, %p1121_p7  ;;  %p928_p2 = por %p927_p10, %p926_p9 }
  0x44   : > { %680 = vmatpush.xpose.msk.msra.mxu1 %vm319_vm0, %v312_v2 }
  0x45   : > { %v327_v19 = vrot.slane %v326_v18, 4  ;;  %p924_p8 = pneg %p923_p4 }
  0x47   : > { %v328_v20 = vadd.f32 %v327_v19, %v326_v18  ;;  %p929_p11 = pnand %p928_p2, %p924_p8 }
  0x48   : > { %681 = vmatpush.xpose.msk.msra.mxu1 %vm319_vm0, %v311_v5 }
  0x49   : > { %v329_v21 = vrot.slane %v328_v20, 2 }
  0x4b   : > { %v330_v22 = vadd.f32 %v329_v21, %v328_v20 }
  0x4d   : > { %v331_v23 = vrot.slane %v330_v22, 1 }
  0x4f   : > { %v332_v24 = vadd.f32 %v331_v23, %v330_v22 }
  0x51   : > { %775 = vrsqrt.f32 %v332_v24  ;;  %vm339_vm3 = vweird.f32 %v332_v24 }
  0x57   : > { %v776_v25 = vpop.eup %775 }
  0x58   : > { %v334_v26 = vmul.f32 %v776_v25, %v332_v24  ;;  %vm340_vm4 = vweird.f32 %v776_v25 }
  0x59   : > { %vm341_vm5 = vmor %vm339_vm3, %vm340_vm4 }
  0x5a   : > { %v335_v27 = vmul.f32 %v776_v25, %v334_v26 }
  0x5c   : > { %v336_v28 = vmul.f32 0.5, %v335_v27 }
  0x5e   : > { %v337_v29 = vsub.f32 1.5, %v336_v28 }
  0x60   : > { %v338_v30 = vmul.f32 %v776_v25, %v337_v29 }
  0x62   : > { %v342_v32 = vsel %vm341_vm5, %v776_v25, %v338_v30 }
  0x63   : > { %v343_v34 = vmin.f32 %v342_v32, 1e+12 }
  0xb2   : > { %v307_v40 = vpop.xlane.xlu0 %306 }
  0xbf   : > { %v365_v35 = vpop.f32.mrf.mxu0 }
  0xc0   : > { %v368_v36 = vmul.f32 %v365_v35, %v343_v34 }
  0xc2   : > { %v371_v37 = vsel %vm310_vm6, %v368_v36, -inf }
  0xc3   : > { %v372_v38 = vmul.f32 14.285714, %v371_v37  ;;  %491 = vst.msk [vmem:[%s1178_s14] sm:$0xff] %vm319_vm0, %v371_v37 }
  0xc5   : > { %v373_v39 = vsel %vm319_vm0, %v372_v38, -inf }
  0xc6   : > { %374 = vmax.xlane.f32.xlu0 %v373_v39 }
 0x139   : > { %v375_v41 = vpop.xlane.xlu0 %374 }
 0x13a   : > { %v376_v42 = vmax.f32 %v307_v40, %v375_v41 }
 0x13c   : > { %v377_v43 = vsub.f32 %v303_v9, %v376_v42  ;;  %v380_v45 = vsub.f32 %v372_v38, %v376_v42 }
 0x13e   : > { %v378_v44 = vmul.f32 1.442695, %v377_v43  ;;  %v381_v46 = vmul.f32 1.442695, %v380_v45 }
 0x140   : > { %777 = vpow2.f32 %v378_v44 }
 0x141   : > { %779 = vpow2.f32 %v381_v46 }
 0x146   : > { %v778_v47 = vpop.eup %777 }
 0x147   : > { %v383_v48 = vsel %vm304_vm1, %v778_v47, 0.0  ;;  %v780_v49 = vpop.eup %779 }
 0x148   : > { %384 = vadd.xlane.f32.xlu1 %v383_v48  ;;  %v386_v50 = vsel %vm319_vm0, %v780_v49, 0.0 }
 0x150   : > { %387 = vadd.xlane.f32.xlu1 %v386_v50 }
 0x1bb   : > { %v385_v51 = vpop.xlane.xlu1 %384 }
 0x1c3   : > { %v388_v52 = vpop.xlane.xlu1 %387 }
 0x1c4   : > { %v389_v53 = vadd.f32 %v388_v52, %v385_v51 }
 0x1c6   : > { %781 = vrcp.f32 %v389_v53  ;;  %v401_v57 = vand.u32 2147483648, %v389_v53  ;;  %v399_v59 = vand.u32 2147483647, %v389_v53  ;;  %vm395_vm8 = vweird.f32 %v389_v53 }
 0x1c8   : > { %v402_v61 = vor.u32 1.1754944e-38, %v401_v57  ;;  %vm400_vm10 = vcmp.eq.f32.partialorder %v399_v59, 8.507059e+37 }
 0x1cc   : > { %v782_v54 = vpop.eup %781 }
 0x1cd   : > { %v391_v55 = vmul.f32 %v782_v54, %v389_v53  ;;  %vm396_vm7 = vweird.f32 %v782_v54 }
 0x1ce   : > { %vm397_vm9 = vmor %vm395_vm8, %vm396_vm7 }
 0x1cf   : > { %v392_v56 = vsub.f32 1.0, %v391_v55 }
 0x1d1   : > { %v393_v58 = vmul.f32 %v782_v54, %v392_v56 }
 0x1d3   : > { %v394_v60 = vadd.f32 %v782_v54, %v393_v58 }
 0x1d5   : > { %v398_v62 = vsel %vm397_vm9, %v782_v54, %v394_v60 }
 0x1d6   : > { %v403_v63 = vsel %vm400_vm10, %v402_v61, %v398_v62 }
 0x1d7   : > { %v405_v0 = vmul.f32 %v778_v47, %v403_v63  ;;  %v406_v2 = vmul.f32 %v780_v49, %v403_v63 }
 0x1d9   : > { %v407_v1 = vsel %vm304_vm1, %v405_v0, 0.0  ;;  %v410_v3 = vsel %vm319_vm0, %v406_v2, 0.0 }
 0x1da   : > { %408 = vadd.xlane.f32.xlu2 %v407_v1 }
 0x1e2   : > { %411 = vadd.xlane.f32.xlu2 %v410_v3 }
 0x24d   : > { %v409_v5 = vpop.xlane.xlu2 %408 }
 0x255   : > { %v412_v6 = vpop.xlane.xlu2 %411 }
 0x256   : > { %v413_v7 = vadd.f32 %v412_v6, %v409_v5 }
 0x258   : > { %v414_v8 = vadd.f32 1e-07, %v413_v7 }
 0x25a   : > { %783 = vrcp.f32 %v414_v8  ;;  %v426_v12 = vand.u32 2147483648, %v414_v8  ;;  %v424_v14 = vand.u32 2147483647, %v414_v8  ;;  %vm420_vm12 = vweird.f32 %v414_v8 }
 0x25c   : > { %v427_v16 = vor.u32 1.1754944e-38, %v426_v12  ;;  %vm425_vm14 = vcmp.eq.f32.partialorder %v424_v14, 8.507059e+37 }
 0x260   : > { %v784_v9 = vpop.eup %783 }
 0x261   : > { %v416_v10 = vmul.f32 %v784_v9, %v414_v8  ;;  %vm421_vm11 = vweird.f32 %v784_v9 }
 0x262   : > { %vm422_vm13 = vmor %vm420_vm12, %vm421_vm11 }
 0x263   : > { %v417_v11 = vsub.f32 1.0, %v416_v10 }
 0x265   : > { %v418_v13 = vmul.f32 %v784_v9, %v417_v11 }
 0x267   : > { %v419_v15 = vadd.f32 %v784_v9, %v418_v13 }
 0x269   : > { %v423_v17 = vsel %vm422_vm13, %v784_v9, %v419_v15 }
 0x26a   : > { %v428_v18 = vsel %vm425_vm14, %v427_v16, %v423_v17 }
 0x26b   : > { %v431_v19 = vmul.f32 %v428_v18, %v406_v2  ;;  %v430_v20 = vmul.f32 %v428_v18, %v405_v0 }
 0x26d   : > { %682 = vmatmul.msk.f32.vlgmr.msra.gmra.mxu1 %vm319_vm0, %v431_v19  ;;  %683 = vmatmul.msk.f32.vlgmr.msra.gmra.mxu2 %vm304_vm1, %v430_v20 }
 0x26e   : > { %932 = shalt.err (!%p929_p11)
}
 0x26f   : > { %706 = dma.vmem_to_hbm [thread:$0]  (%p1121_p7), %s525_s6, 128, %s527_s7, %s498_s8  }
 0x270   : > { %s508_s23 = scalar_lea.hbm %s1244_s4, %s686_s15  ;;  %s292_s26 = scalar_lea.vmem [#allocation10], %s675_s24 }
 0x271   : > { %s510_s10 = sshll.u32 %s292_s26, 4  ;;  %s512_s29 = sshll.u32 %s508_s23, 4  ;;  %s511_s10 = int_to_ptr.vmem [resolvable:$true] %s510_s10  ;;  %s513_s29 = int_to_ptr.hbm [resolvable:$true] %s512_s29 }
 0x272   : > { %s493_s9 = scalar_lea.sflag [#allocation4], %s1157_s12  ;;  %s947_s30 = sshra.s32 %s513_s29, 4  ;;  %s948_s30 = int_to_ptr.hbm [resolvable:$true] %s947_s30 }
 0x273   : > { %s949_s6 = scalar_lea.hbm %s948_s30, 8  ;;  %s953_s24 = scalar_lea.hbm %s1244_s4, 16 }
 0x274   : > { %p950_p12 = scmp.ne.s32.totalorder %s948_s30, %s949_s6  ;;  %p954_p3 = scmp.lt.s32.totalorder %s948_s30, %s1244_s4 }
 0x275   : > { %p955_p5 = scmp.lt.s32.totalorder %s953_s24, %s949_s6 }
 0x276   : > { %p951_p13 = pnand %p950_p12, %p1121_p7 }
 0x277   : > { %p956_p1 = por %p955_p5, %p954_p3 }
 0x278   : > { %p952_p0 = pneg %p951_p13 }
 0x27a   : > { %p957_p4 = pnand %p956_p1, %p952_p0 }
 0x2ea   : > { %v464_v21 = vpop.f32.mrf.mxu1 }
 0x2f0   : > { %v487_v22 = vpop.f32.mrf.mxu2 }
 0x2f1   : > { %v488_v23 = vadd.f32 %v487_v22, %v464_v21 }
 0x2f3   : > { %490 = vst.msk [vmem:[%s292_s26] sm:$0xff] %vm344_vm2, %v488_v23 }
 0x2f4   : > { %960 = shalt.err (!%p957_p4)
}
 0x2f5   : > { %705 = dma.vmem_to_hbm [thread:$0]  (%p1121_p7), %s511_s10, 128, %s513_s29, %s493_s9  }
 0x2f6 PF: > { %s538_s12 = sand.u32 1, %s999_s18   ;;  %p1251_p8 = scmp.ge.s32.totalorder %s1011_s21, 2 }
 0x2f7   : > { %s539_s11 = scalar_lea.sflag [#allocation4], %s538_s12 }
 0x2f8   : > { %p724_p9 = pnand %p1251_p8, %p1083_p6 }
 0x2fa   : > { %p725_p10 = pneg %p724_p9 }
 0x2fc   : > { %990 = dma.done.wait (%p725_p10), %s539_s11, 128  }
 0x2fd   : > { %992 = vsyncadd (%p725_p10), %s539_s11, 4294967168  ;;  %s549_s13 = scalar_lea.sflag [#allocation12], %s538_s12 }
 0x2fe   : > { %994 = dma.done.wait (%p725_p10), %s549_s13, 128  }
 0x2ff   : > { %996 = vsyncadd (%p725_p10), %s549_s13, 4294967168  ;;  %p24_p7 = scmp.ge.s32.totalorder %s1107_s17, 4   ;;  %s1252_s18 = smov %s1003_s19 }
 0x300   : > { %s1253_s19 = smov %s1007_s20  ;;  %s1254_s20 = smov %s1117_s27 }
 0x301   : > { %s1255_s21 = smov %s1107_s17  ;;  %26 = sbr.rel (!%p24_p7) target bundleno = 9 (0x9), region = 111 }
 0x306   :  { %555 = vsyncpa [#allocation3], 1 }
 0x307   :  { %557 = vsyncpa [#allocation3 + $0x1], 1 }
 0x308   :  { %558 = vsyncpa [#allocation6], 1 }
 0x309   :  { %559 = vsyncpa [#allocation9], 1 }
 0x30a   :  { %561 = vsyncpa [#allocation9 + $0x1], 1 }
 0x30b   :  { %562 = vsyncpa [#allocation4], 1 }
 0x30c   :  { %564 = vsyncpa [#allocation4 + $0x1], 1 }
 0x30d   :  { %565 = vsyncpa [#allocation12], 1 }
 0x30e   :  { %567 = vsyncpa [#allocation12 + $0x1], 1 }

</bundles_post_ra>
